<compile_context>
chip_gen: v5e
topology: v5e:2x2
jax: 0.10.0
libtpu: 0.0.40
codegen_flags: <defaults>
</compile_context>

<pallas_src>
import jax
import jax.numpy as jnp
from jax import lax
from jax.experimental import pallas as pl
from jax.experimental.pallas import tpu as pltpu


def _bilinear_attn_kernel(k_ref, v_ref, m_ref, w_ref, o_ref):
    # k_ref : (Bb, Hk)     block of query vectors
    # v_ref : (Bb, S, Hv)  block of value matrices (bulk of the HBM traffic)
    # m_ref : (Bb, S)      block of attention masks (1 = keep, 0 = mask out)
    # w_ref : (Hv, Hk)     shared bilinear weight (same block every grid step)
    # o_ref : (Bb, S)      output attention distributions

    # One full-MXU matmul for the whole block: wk[b, h] = sum_j k[b, j] * W[h, j].
    wk = lax.dot_general(
        k_ref[...].astype(jnp.float32), w_ref[...].astype(jnp.float32),
        (((1,), (1,)), ((), ())),
        preferred_element_type=jnp.float32)                       # (Bb, Hv)

    # scores[b, s] = sum_h V[b, s, h] * wk[b, h]
    # Dense VPU multiply (sublane-broadcast of wk along S) + lane reduce over
    # Hv (XLU).  ~2 vector ops per streamed V element — far below the DMA time
    # for this memory-bound kernel — and no per-row M=1 MXU matmuls.
    v = v_ref[...].astype(jnp.float32)                            # (Bb, S, Hv)
    scores = jnp.sum(v * wk[:, None, :], axis=-1)                 # (Bb, S)

    # Masked softmax along the sequence (lane) axis — dense (Bb, S) f32 math.
    # NOTE: -9999.0 is a *soft* mask (matches the PyTorch module): a fully
    # masked row yields a ~uniform distribution rather than zeros.
    scores = scores + (1.0 - m_ref[...].astype(jnp.float32)) * (-9999.0)
    s_max = jnp.max(scores, axis=-1, keepdims=True)
    e = jnp.exp(scores - s_max)
    denom = jnp.sum(e, axis=-1, keepdims=True)
    o_ref[...] = (e * (1.0 / denom)).astype(o_ref.dtype)          # Bb divides only


def _choose_block_b(B, S, Hv, itemsize):
    """How many batch rows each grid step processes."""
    budget = 24 * 1024 * 1024                     # target VMEM usage for tiles
    # per-row bytes: double-buffered V tile + in-kernel f32 intermediates
    # (f32 view of V + the product before the lane reduce) + small 2-D tiles.
    per_row = 2 * S * Hv * itemsize + 8 * S * Hv + 32 * S
    bb = max(1, budget // max(per_row, 1))
    bb = min(bb, 256)                             # bound block size / compile time
    # Keep >= 2 grid steps when B allows, so the "parallel" grid axis can be
    # sharded across v7x's two TensorCores.
    bb = min(bb, max(1, pl.cdiv(B, 2)))
    if bb >= B:
        return B
    # Non-final blocks keep the sublane dim a multiple of 8 (dense blocks).
    bb = max(8, (bb // 8) * 8)
    return min(bb, B)


def bilinear_attn(k, V, attention_mask, W):
    """Pallas implementation of BilinearAttn.forward.

    k:              (B, Hk)
    V:              (B, S, Hv)
    attention_mask: (B, S)    (1 = keep, 0 = mask out; any numeric dtype)
    W:              (Hv, Hk)
    returns:        (B, S)    softmax attention weights
    """
    B, S, Hv = V.shape
    Hk = k.shape[1]
    out_dtype = jnp.result_type(k.dtype, V.dtype, W.dtype)

    bb = _choose_block_b(B, S, Hv, jnp.dtype(V.dtype).itemsize)
    grid = (pl.cdiv(B, bb),)

    return pl.pallas_call(
        _bilinear_attn_kernel,
        out_shape=jax.ShapeDtypeStruct((B, S), out_dtype),
        grid_spec=pltpu.PrefetchScalarGridSpec(
            num_scalar_prefetch=0,
            grid=grid,
            in_specs=[
                pl.BlockSpec((bb, Hk), lambda b: (b, 0)),         # k
                pl.BlockSpec((bb, S, Hv), lambda b: (b, 0, 0)),   # V (HBM traffic)
                pl.BlockSpec((bb, S), lambda b: (b, 0)),          # mask
                pl.BlockSpec((Hv, Hk), lambda b: (0, 0)),         # W (fetched once)
            ],
            out_specs=pl.BlockSpec((bb, S), lambda b: (b, 0)),
        ),
        compiler_params=pltpu.CompilerParams(
            dimension_semantics=("parallel",),
            # Raise the scoped VMEM limit above the 16/32 MiB defaults; the
            # block-size budget targets ~24-26 MiB of actual usage, leaving
            # headroom even on v7x's 64 MiB physical VMEM.
            vmem_limit_bytes=48 * 1024 * 1024,
        ),
    )(k, V, attention_mask, W)


def _reference(k, V, attention_mask, W):
    # pure-JAX reference matching the PyTorch forward (full-f32 matmuls)
    scores = jnp.einsum("bsv,vk,bk->bs", V, W, k,
                        precision=lax.Precision.HIGHEST)
    scores = scores + (1.0 - attention_mask) * (-9999.0)
    return jax.nn.softmax(scores, axis=-1)


if __name__ == "__main__":
    # --- Test 1: shapes implied by the module (batch=2, seq=8, Hv=32, Hk=16).
    B, S, Hv, Hk = 2, 8, 32, 16
    key = jax.random.PRNGKey(0)
    kw, kk_, kv = jax.random.split(key, 3)

    # deterministic xavier-uniform init of W: U(-a, a), a = sqrt(6 / (Hv + Hk))
    bound = (6.0 / (Hv + Hk)) ** 0.5
    W = jax.random.uniform(kw, (Hv, Hk), jnp.float32, minval=-bound, maxval=bound)
    k = jax.random.normal(kk_, (B, Hk), jnp.float32)
    V = jax.random.normal(kv, (B, S, Hv), jnp.float32)
    attention_mask = jnp.array(
        [[1.0] * S,
         [1.0] * 5 + [0.0] * (S - 5)], dtype=jnp.float32)

    out = bilinear_attn(k, V, attention_mask, W)
    jax.block_until_ready(out)
    ref = _reference(k, V, attention_mask, W)
    assert out.shape == (B, S)
    assert jnp.allclose(out, ref, atol=1e-5, rtol=1e-5), (out, ref)

    # --- Test 2: multi-block grid (B=16 -> Bb=8, 2 grid steps), lane-dense S=128.
    B2, S2, Hv2, Hk2 = 16, 128, 64, 32
    kw2, kk2, kv2 = jax.random.split(jax.random.PRNGKey(1), 3)
    bound2 = (6.0 / (Hv2 + Hk2)) ** 0.5
    W2 = jax.random.uniform(kw2, (Hv2, Hk2), jnp.float32, minval=-bound2, maxval=bound2)
    k2 = jax.random.normal(kk2, (B2, Hk2), jnp.float32)
    V2 = jax.random.normal(kv2, (B2, S2, Hv2), jnp.float32)
    lens = (jnp.arange(B2) + 1) * (S2 // B2)
    mask2 = (jnp.arange(S2)[None, :] < lens[:, None]).astype(jnp.float32)

    out2 = bilinear_attn(k2, V2, mask2, W2)
    jax.block_until_ready(out2)
    ref2 = _reference(k2, V2, mask2, W2)
    assert out2.shape == (B2, S2)
    assert jnp.allclose(out2, ref2, atol=1e-4, rtol=1e-4), float(
        jnp.max(jnp.abs(out2 - ref2)))

    print("KERNEL_OK")
</pallas_src>

<mosaic_0001>
module attributes {stable_mosaic.version = 11 : i64} {
  func.func @_bilinear_attn_kernel(%arg0: i32, %arg1: memref<2x16xf32, #tpu.memory_space<vmem>>, %arg2: memref<2x8x32xf32, #tpu.memory_space<vmem>>, %arg3: memref<2x8xf32, #tpu.memory_space<vmem>>, %arg4: memref<32x16xf32, #tpu.memory_space<vmem>>, %arg5: memref<2x8xf32, #tpu.memory_space<vmem>>) attributes {dimension_semantics = [#tpu.dimension_semantics<parallel>], iteration_bounds = array<i64: 1>, scalar_prefetch = 0 : i64, scratch_operands = 0 : i64, tpu.core_type = #tpu.core_type<tc>, window_params = [{transform_indices = @transform_0, window_bounds = array<i64: 2, 16>}, {transform_indices = @transform_1, window_bounds = array<i64: 2, 8, 32>}, {transform_indices = @transform_2, window_bounds = array<i64: 2, 8>}, {pipeline_mode = #tpu.pipeline_mode<synchronous>, transform_indices = @transform_3, window_bounds = array<i64: 32, 16>}, {transform_indices = @transform_4, window_bounds = array<i64: 2, 8>}]} {
    %c0 = arith.constant 0 : index
    %c0_0 = arith.constant 0 : index
    %0 = vector.load %arg1[%c0, %c0_0] : memref<2x16xf32, #tpu.memory_space<vmem>>, vector<2x16xf32>
    %c0_1 = arith.constant 0 : index
    %c0_2 = arith.constant 0 : index
    %1 = vector.load %arg4[%c0_1, %c0_2] : memref<32x16xf32, #tpu.memory_space<vmem>>, vector<32x16xf32>
    %cst = arith.constant dense<0.000000e+00> : vector<2x32xf32>
    %2 = tpu.matmul %0, %1, %cst {dimension_numbers = #tpu.dot_dimension_numbers<[1], [1], [0], [0], [0, 0, 1, 0], [], []>} : vector<2x16xf32>, vector<32x16xf32>, vector<2x32xf32> -> vector<2x32xf32>
    %c0_3 = arith.constant 0 : index
    %c0_4 = arith.constant 0 : index
    %c0_5 = arith.constant 0 : index
    %3 = vector.load %arg2[%c0_3, %c0_4, %c0_5] : memref<2x8x32xf32, #tpu.memory_space<vmem>>, vector<2x8x32xf32>
    %4 = vector.shape_cast %2 : vector<2x32xf32> to vector<2x1x32xf32>
    %5 = vector.broadcast %4 : vector<2x1x32xf32> to vector<2x8x32xf32>
    %6 = arith.mulf %3, %5 : vector<2x8x32xf32>
    %cst_6 = arith.constant dense<0.000000e+00> : vector<2x8xf32>
    %7 = vector.multi_reduction <add>, %6, %cst_6 [2] : vector<2x8x32xf32> to vector<2x8xf32>
    %c0_7 = arith.constant 0 : index
    %c0_8 = arith.constant 0 : index
    %8 = vector.load %arg3[%c0_7, %c0_8] : memref<2x8xf32, #tpu.memory_space<vmem>>, vector<2x8xf32>
    %cst_9 = arith.constant 1.000000e+00 : f32
    %9 = vector.broadcast %cst_9 : f32 to vector<2x8xf32>
    %10 = arith.subf %9, %8 : vector<2x8xf32>
    %cst_10 = arith.constant -9.999000e+03 : f32
    %11 = vector.broadcast %cst_10 : f32 to vector<2x8xf32>
    %12 = arith.mulf %10, %11 : vector<2x8xf32>
    %13 = arith.addf %7, %12 : vector<2x8xf32>
    %cst_11 = arith.constant dense<0xFF800000> : vector<2xf32>
    %14 = vector.multi_reduction <maximumf>, %13, %cst_11 [1] : vector<2x8xf32> to vector<2xf32>
    %15 = vector.shape_cast %14 : vector<2xf32> to vector<2x1xf32>
    %16 = vector.broadcast %15 : vector<2x1xf32> to vector<2x8xf32>
    %17 = arith.subf %13, %16 : vector<2x8xf32>
    %18 = math.exp %17 : vector<2x8xf32>
    %cst_12 = arith.constant dense<0.000000e+00> : vector<2xf32>
    %19 = vector.multi_reduction <add>, %18, %cst_12 [1] : vector<2x8xf32> to vector<2xf32>
    %20 = vector.shape_cast %19 : vector<2xf32> to vector<2x1xf32>
    %cst_13 = arith.constant 1.000000e+00 : f32
    %21 = vector.broadcast %cst_13 : f32 to vector<2x1xf32>
    %22 = arith.divf %21, %20 : vector<2x1xf32>
    %23 = vector.broadcast %22 : vector<2x1xf32> to vector<2x8xf32>
    %24 = arith.mulf %18, %23 : vector<2x8xf32>
    %c0_14 = arith.constant 0 : index
    %c0_15 = arith.constant 0 : index
    %25 = vector.load %arg5[%c0_14, %c0_15] : memref<2x8xf32, #tpu.memory_space<vmem>>, vector<2x8xf32>
    tpu.vector_store %arg5[%c0_14, %c0_15], %24 {strides = array<i32>} : memref<2x8xf32, #tpu.memory_space<vmem>>, vector<2x8xf32>,
    return
  }
  func.func @transform_0(%arg0: i32) -> (i32, i32) {
    %c0_i32 = arith.constant 0 : i32
    %c0_i32_0 = arith.constant 0 : i32
    return %arg0, %c0_i32 : i32, i32
  }
  func.func @transform_1(%arg0: i32) -> (i32, i32, i32) {
    %c0_i32 = arith.constant 0 : i32
    %c0_i32_0 = arith.constant 0 : i32
    %c0_i32_1 = arith.constant 0 : i32
    return %arg0, %c0_i32, %c0_i32_0 : i32, i32, i32
  }
  func.func @transform_2(%arg0: i32) -> (i32, i32) {
    %c0_i32 = arith.constant 0 : i32
    %c0_i32_0 = arith.constant 0 : i32
    return %arg0, %c0_i32 : i32, i32
  }
  func.func @transform_3(%arg0: i32) -> (i32, i32) {
    %c0_i32 = arith.constant 0 : i32
    %c0_i32_0 = arith.constant 0 : i32
    %c0_i32_1 = arith.constant 0 : i32
    return %c0_i32, %c0_i32_0 : i32, i32
  }
  func.func @transform_4(%arg0: i32) -> (i32, i32) {
    %c0_i32 = arith.constant 0 : i32
    %c0_i32_0 = arith.constant 0 : i32
    return %arg0, %c0_i32 : i32, i32
  }
}

</mosaic_0001>

<bundles_post_ra>
// kernel: tpu_custom_call.1
= control target key start
LH: loop header
LB: loop body
LE: loop exit
PB: predicated region body
PF: predicated region fallthrough
CT: control target
= control target key end

     0   :  { %vm23_vm0 = vcmask 130048   ;;  %v81_v1 = vlaneseq  ;;  %s302_s0 = inlined_call_operand.vmem [shape: f32[2,16], index: 0, kind: input, shape index: {}]   ;;  %s303_s1 = inlined_call_operand.vmem [shape: f32[2,8,32], index: 1, kind: input, shape index: {}]   ;;  %s304_s2 = inlined_call_operand.vmem [shape: f32[2,8], index: 2, kind: input, shape index: {}]   ;;  %s305_s3 = inlined_call_operand.vmem [shape: f32[32,16], index: 3, kind: input, shape index: {}]   ;;  %s306_s4 = inlined_call_operand.hbm [shape: f32[2,8], index: 4, kind: output, shape index: {}]  }
   0x1   :  { %v22_v0 = vld [vmem:[%s305_s3 + $0x18] sm:$0xff]  ;;  %v76_v2 = vld [vmem:[%s304_s2] sm:$0x3]  ;;  %v21_v3 = vld [vmem:[%s305_s3 + $0x10] sm:$0xff] }
   0x2   :  { %194 = vmatpush.xpose.msk.msra.mxu0 %vm23_vm0, %v22_v0  ;;  %v82_v4 = vshrl.u32 %v81_v1, 7  ;;  %v77_v5 = vsub.f32 1.0, %v76_v2 }
   0x3   :  { %9 = vsyncpa [#allocation3], 0  ;;  %v20_v7 = vld [vmem:[%s305_s3 + $0x8] sm:$0xff]  ;;  %v19_v9 = vld [vmem:[%s305_s3] sm:$0xff]  ;;  %vm69_vm1 = vcmask 261120   ;;  %v237_v22 = vmov 0  }
   0x4   :  { %201 = vset.pattern.permute.xlu1 %v82_v4  ;;  %v78_v6 = vmul.f32 -9999.0, %v77_v5  ;;  %v18_v10 = vld [vmem:[%s302_s0] sm:$0x3]  ;;  %v60_v19 = vld [vmem:[%s303_s1 + $0x8] sm:$0xff]  ;;  %202 = vset.pattern.permute.xlu2 %v237_v22  ;;  %v107_v30 = vand.u32 127, %v81_v1 }
   0x5   :  { %v59_v13 = vld [vmem:[%s303_s1] sm:$0xff]  ;;  %204 = vset.pattern.permute.xlu0 %v237_v22  ;;  %vm110_vm2 = vcmask 1041409   ;;  %vm113_vm3 = vcmask 58368   ;;  %s238_s0 = smov [#allocation2]   ;;  %s185_s5 = sshll.u32 %s306_s4, 4  ;;  %s186_s5 = int_to_ptr.hbm [resolvable:$true] %s185_s5 }
   0x6   :  { %195 = vmatpush.xpose.msk.msra.mxu0 %vm23_vm0, %v21_v3  ;;  %v80_v8 = vperm.slane %v78_v6, 0  ;;  %v87_v11 = vperm.slane %v78_v6, 1  ;;  %s183_s1 = sshll.u32 %s238_s0, 4  ;;  %s184_s1 = int_to_ptr.vmem [resolvable:$true] %s183_s1 }
   0xa   :  { %196 = vmatpush.xpose.msk.msra.mxu0 %vm23_vm0, %v20_v7 }
   0xc   :  { %85 = vperm.xlu1 %201, %v80_v8  }
   0xe   :  { %197 = vmatpush.xpose.msk.msra.mxu0 %vm23_vm0, %v19_v9 }
  0x11   :  { %198 = vmatmul.msk.f32.vlgmr.msra.gmra.mxu0 %vm23_vm0, %v18_v10 }
  0x14   :  { %92 = vperm.xlu1 %201, %v87_v11  }
  0x1c   :  { %203 = vset.pattern.permute.xlu1 %v237_v22 }
  0x7e   :  { %v86_v23 = vpop.permute.xlu1 %85 }
  0x86   :  { %v93_v26 = vpop.permute.xlu1 %92 }
  0x8e   :  { %v56_v12 = vpop.f32.mrf.mxu0 }
  0x8f   :  { %v62_v14 = vrot.slane %v56_v12, 1  ;;  %v63_v15 = vperm.slane %v56_v12, 0 }
  0x91   :  { %v67_v16 = vmul.f32 %v63_v15, %v59_v13  ;;  %v64_v17 = vperm.slane %v62_v14, 0 }
  0x93   :  { %v70_v18 = vsel %vm69_vm1, %v67_v16, 0.0  ;;  %v68_v20 = vmul.f32 %v64_v17, %v60_v19 }
  0x94   :  { %71 = vadd.xlane.f32.xlu0 %v70_v18 }
  0x95   :  { %v73_v21 = vsel %vm69_vm1, %v68_v20, 0.0 }
  0x9c   :  { %74 = vadd.xlane.f32.xlu0 %v73_v21 }
 0x107   :  { %v72_v24 = vpop.xlane.xlu0 %71 }
 0x108   :  { %v96_v25 = vadd.f32 %v86_v23, %v72_v24 }
 0x10a   :  { %101 = vperm.xlu2 %202, %v96_v25  }
 0x10f   :  { %v75_v27 = vpop.xlane.xlu0 %74 }
 0x110   :  { %v97_v28 = vadd.f32 %v93_v26, %v75_v27 }
 0x112   :  { %104 = vperm.xlu2 %202, %v97_v28  }
 0x164   :  { %v102_v29 = vpop.permute.xlu2 %101 }
 0x165   :  { %v108_v32 = vperm.slane %v102_v29, %v107_v30 }
 0x16c   :  { %v105_v31 = vpop.permute.xlu2 %104 }
 0x16d   :  { %v109_v33 = vperm.slane %v105_v31, %v107_v30 }
 0x16f   :  { %v111_v34 = vsel %vm110_vm2, %v109_v33, %v108_v32 }
 0x170   :  { %v114_v35 = vsel %vm113_vm3, %v111_v34, -inf }
 0x171   :  { %115 = vmax.xlane.f32.xlu0 %v114_v35 }
 0x1e4   :  { %v116_v36 = vpop.xlane.xlu0 %115 }
 0x1e5   :  { %v118_v37 = vperm.slane %v116_v36, 0  ;;  %v119_v38 = vperm.slane %v116_v36, 1 }
 0x1e7   :  { %v122_v39 = vsub.f32 %v96_v25, %v118_v37  ;;  %v123_v40 = vsub.f32 %v97_v28, %v119_v38 }
 0x1e9   :  { %v124_v41 = vmul.f32 1.442695, %v122_v39  ;;  %v126_v42 = vmul.f32 1.442695, %v123_v40 }
 0x1eb   :  { %205 = vpow2.f32 %v124_v41 }
 0x1ec   :  { %207 = vpow2.f32 %v126_v42 }
 0x1f1   :  { %v206_v43 = vpop.eup %205 }
 0x1f2   :  { %v208_v44 = vpop.eup %207  ;;  %131 = vperm.xlu1 %203, %v206_v43  }
 0x1f3   :  { %134 = vperm.xlu2 %202, %v208_v44  }
 0x24d   :  { %v135_v45 = vpop.permute.xlu2 %134 }
 0x24e   :  { %v137_v47 = vperm.slane %v135_v45, %v107_v30 }
 0x264   :  { %v132_v46 = vpop.permute.xlu1 %131 }
 0x265   :  { %v136_v48 = vperm.slane %v132_v46, %v107_v30 }
 0x267   :  { %v138_v49 = vsel %vm110_vm2, %v137_v47, %v136_v48 }
 0x268   :  { %v140_v50 = vsel %vm113_vm3, %v138_v49, 0.0 }
 0x269   :  { %141 = vadd.xlane.f32.xlu0 %v140_v50 }
 0x2dc   :  { %v142_v51 = vpop.xlane.xlu0 %141 }
 0x2dd   :  { %209 = vrcp.f32 %v142_v51  ;;  %v154_v55 = vand.u32 2147483648, %v142_v51  ;;  %v152_v57 = vand.u32 2147483647, %v142_v51  ;;  %vm148_vm5 = vweird.f32 %v142_v51 }
 0x2df   :  { %v155_v59 = vor.u32 1.1754944e-38, %v154_v55  ;;  %vm153_vm7 = vcmp.eq.f32.partialorder %v152_v57, 8.507059e+37 }
 0x2e3   :  { %v210_v52 = vpop.eup %209 }
 0x2e4   :  { %v144_v53 = vmul.f32 %v210_v52, %v142_v51  ;;  %vm149_vm4 = vweird.f32 %v210_v52 }
 0x2e5   :  { %vm150_vm6 = vmor %vm148_vm5, %vm149_vm4 }
 0x2e6   :  { %v145_v54 = vsub.f32 1.0, %v144_v53 }
 0x2e8   :  { %v146_v56 = vmul.f32 %v210_v52, %v145_v54 }
 0x2ea   :  { %v147_v58 = vadd.f32 %v210_v52, %v146_v56 }
 0x2ec   :  { %v151_v60 = vsel %vm150_vm6, %v210_v52, %v147_v58 }
 0x2ed   :  { %v156_v61 = vsel %vm153_vm7, %v155_v59, %v151_v60 }
 0x2ee   :  { %v160_v62 = vperm.slane %v156_v61, 1  ;;  %v159_v63 = vperm.slane %v156_v61, 0 }
 0x2f0   :  { %v164_v0 = vmul.f32 %v208_v44, %v160_v62  ;;  %v163_v1 = vmul.f32 %v206_v43, %v159_v63 }
 0x2f2   :  { %171 = vperm.xlu2 %202, %v164_v0   ;;  %168 = vperm.xlu1 %203, %v163_v1  }
 0x34c   :  { %v172_v2 = vpop.permute.xlu2 %171 }
 0x34d   :  { %v174_v4 = vperm.slane %v172_v2, %v107_v30 }
 0x364   :  { %v169_v3 = vpop.permute.xlu1 %168 }
 0x365   :  { %v173_v5 = vperm.slane %v169_v3, %v107_v30 }
 0x367   :  { %v175_v6 = vsel %vm110_vm2, %v174_v4, %v173_v5 }
 0x368   :  { %177 = vst.msk [vmem:[#allocation2] sm:$0x3] %vm113_vm3, %v175_v6 }
 0x369   :  { %188 = dma.vmem_to_hbm [thread:$0]  %s184_s1, 32, %s186_s5, [#allocation3]  }
 0x36a   :  { %235 = dma.done.wait [#allocation3], 32  }
 0x36b   :  { %236 = vsyncadd [#allocation3], 4294967264 }
 0x36c   :  { %193 = vsyncpa [#allocation3], 1 }

</bundles_post_ra>
